<compile_context>
chip_gen: v7x
topology: tpu7x:2x2x1
jax: 0.10.0
libtpu: 0.0.40
codegen_flags: <defaults>
</compile_context>

<pallas_src>
import math

import numpy as np

import jax
import jax.numpy as jnp
from jax.experimental import pallas as pl
from jax.experimental.pallas import tpu as pltpu


def padding_expression(kernel_size, stride, dilation=1):
    # Same formula as the PyTorch module (Ceil of the symbolic expression).
    return math.ceil((dilation * (kernel_size - 1) - stride + 1) / 2)


def _build_tap_matrices(w_oihw, width, padding):
    """Fold the horizontal conv taps (and horizontal zero padding) of one layer
    into K block-Toeplitz matrices.

    Returns (K, W*Cin, W*Cout) with
        M[ky, wi*Cin + ci, w*Cout + co] = w[co, ci, ky, wi - w + padding]
    whenever 0 <= wi - w + padding < K, else 0.  For every vertical tap ky a
    single matmul of the row-padded input slab (N*H, W*Cin) against M[ky]
    accumulates that tap's contribution to every output position at once.
    """
    w = np.asarray(w_oihw)                       # (Cout, Cin, K, K)
    cout, cin, k, _ = w.shape
    w_hwio = np.transpose(w, (2, 3, 1, 0))       # (K, K, Cin, Cout)
    mats = np.zeros((k, width * cin, width * cout), np.float32)
    for ky in range(k):
        for w_out in range(width):
            for kx in range(k):
                wi = w_out + kx - padding
                if 0 <= wi < width:              # out-of-range == horizontal zero pad
                    mats[ky,
                         wi * cin:(wi + 1) * cin,
                         w_out * cout:(w_out + 1) * cout] = w_hwio[ky, kx]
    return jnp.asarray(mats)


def _fused_convrelu_kernel(x_ref, m1_ref, b1_ref, m2_ref, b2_ref, o_ref,
                           x1p, x2p):
    """Fused (Conv2d + ReLU) x 2 for the whole batch in one grid step.

    x_ref : (N, H, W*C0)        input, width*channels flattened on the lane axis
    m1_ref: (K, W*C0, W*C1)     layer-1 block-Toeplitz tap matrices
    b1_ref: (1, W*C1)           layer-1 bias tiled over width
    m2_ref: (K, W*C1, W*C2)     layer-2 tap matrices
    b2_ref: (1, W*C2)
    o_ref : (N, H, W*C2)        lane-dense output (last dim = 128)
    x1p   : (N, H+2*P1, W*C0)   VMEM scratch: row-padded layer-1 input
    x2p   : (N, H+2*P2, W*C1)   VMEM scratch: row-padded layer-2 input
    """
    n, h, wc0 = x_ref.shape
    k, _, wc1 = m1_ref.shape
    _, _, wc2 = m2_ref.shape
    nh = n * h
    p1 = (x1p.shape[1] - h) // 2
    p2 = (x2p.shape[1] - h) // 2

    # ---- layer 1: vertical zero padding in VMEM (horizontal padding is
    #      already folded into the tap matrices) ----
    x1p[...] = jnp.zeros_like(x1p)
    x1p[:, p1:p1 + h, :] = x_ref[...]

    acc1 = jnp.zeros((nh, wc1), jnp.float32)
    for ky in range(k):                                     # static unroll, K=3
        lhs = x1p[:, ky:ky + h, :].reshape(nh, wc0)         # (N*H, W*C0)
        acc1 += jnp.dot(lhs, m1_ref[ky],
                        preferred_element_type=jnp.float32)
    h1 = jnp.maximum(acc1 + b1_ref[...], 0.0)               # (N*H, W*C1)

    # ---- layer 2: intermediate never leaves VMEM ----
    x2p[...] = jnp.zeros_like(x2p)
    x2p[:, p2:p2 + h, :] = h1.reshape(n, h, wc1)

    acc2 = jnp.zeros((nh, wc2), jnp.float32)
    for ky in range(k):
        lhs = x2p[:, ky:ky + h, :].reshape(nh, wc1)         # (N*H, W*C1)
        acc2 += jnp.dot(lhs, m2_ref[ky],
                        preferred_element_type=jnp.float32)
    out = jnp.maximum(acc2 + b2_ref[...], 0.0)              # (N*H, W*C2)
    o_ref[...] = out.reshape(n, h, wc2).astype(o_ref.dtype)


def fused_convrelu_pallas(x_flat, m1, b1, m2, b2, pad1, pad2):
    """Single pallas_call: whole batch, both layers, padding done in-kernel."""
    n, h, wc0 = x_flat.shape
    k, _, wc1 = m1.shape
    _, _, wc2 = m2.shape
    # TODO(synk): if the NAS search space scales N/H/W up, grid over the batch
    # (core_parallel on v7x's two TensorCores) and re-derive block sizes
    # against v7x's 64 MiB VMEM; at this toy size one step is fastest.
    return pl.pallas_call(
        _fused_convrelu_kernel,
        out_shape=jax.ShapeDtypeStruct((n, h, wc2), x_flat.dtype),
        grid_spec=pltpu.PrefetchScalarGridSpec(
            num_scalar_prefetch=0,
            grid=(1,),                      # one step: launch/grid overhead once
            in_specs=[
                pl.BlockSpec((n, h, wc0), lambda i: (0, 0, 0)),
                pl.BlockSpec((k, m1.shape[1], wc1), lambda i: (0, 0, 0)),
                pl.BlockSpec((1, wc1), lambda i: (0, 0)),
                pl.BlockSpec((k, m2.shape[1], wc2), lambda i: (0, 0, 0)),
                pl.BlockSpec((1, wc2), lambda i: (0, 0)),
            ],
            out_specs=pl.BlockSpec((n, h, wc2), lambda i: (0, 0, 0)),
            scratch_shapes=[
                pltpu.VMEM((n, h + 2 * pad1, wc0), jnp.float32),
                pltpu.VMEM((n, h + 2 * pad2, wc1), jnp.float32),
            ],
        ),
        compiler_params=pltpu.CompilerParams(
            dimension_semantics=("arbitrary",)),
    )(x_flat, m1, b1, m2, b2)


class ConvReluBlock:
    """JAX/Pallas port of hannah's ConvReluBlock with a fixed parametrization:
    depth=2, kernel_size=3, stride=1, out_channels=(8, 8).
    Forward = Conv2d -> ReLU -> Conv2d -> ReLU, fused into one Pallas kernel."""

    def __init__(self, key, input_shape, out_channels=(8, 8),
                 kernel_size=3, stride=1):
        _, in_c, h, w = input_shape
        self.h, self.w = h, w
        self.layers = []              # (w_oihw, bias, stride, pad): checkpoint layout
        for d, out_c in enumerate(out_channels):
            kw, kb = jax.random.split(jax.random.fold_in(key, d))
            fan_in = in_c * kernel_size * kernel_size
            bound = 1.0 / math.sqrt(fan_in)        # PyTorch Conv2d default init
            w_oihw = jax.random.uniform(
                kw, (out_c, in_c, kernel_size, kernel_size),
                jnp.float32, -bound, bound)
            bias = jax.random.uniform(kb, (out_c,), jnp.float32, -bound, bound)
            pad = padding_expression(kernel_size, stride)
            self.layers.append((w_oihw, bias, stride, pad))
            in_c = out_c

        # Hoisted, kernel-ready parameters (computed ONCE, not per call):
        # block-Toeplitz tap matrices and width-tiled biases.
        self.tap_mats = [_build_tap_matrices(wl, w, pd)
                         for (wl, _b, _s, pd) in self.layers]
        self.tiled_biases = [jnp.tile(b, w)[None, :]
                             for (_w, b, _s, _p) in self.layers]
        self.pads = [pd for (_w, _b, _s, pd) in self.layers]
        # TODO(synk): stride > 1 (spatial-halving) NAS choices and depth != 2
        # are not implemented in the fused Pallas kernel; this parametrization
        # uses stride=1, depth=2 (stride_product = 1 <= input_shape[2]).

    def __call__(self, x_nchw):
        n, c0, h, w = x_nchw.shape
        # NCHW -> NHWC -> (N, H, W*C): plain-JAX layout glue outside the kernel.
        x_flat = jnp.transpose(x_nchw, (0, 2, 3, 1)).reshape(n, h, w * c0)
        out_flat = fused_convrelu_pallas(
            x_flat,
            self.tap_mats[0], self.tiled_biases[0],
            self.tap_mats[1], self.tiled_biases[1],
            self.pads[0], self.pads[1])
        c_out = self.layers[-1][0].shape[0]
        out = out_flat.reshape(n, h, w, c_out)
        return jnp.transpose(out, (0, 3, 1, 2))            # NHWC -> NCHW


def _reference(x_nchw, layers):
    """Pure-JAX reference matching torch.nn.Conv2d + ReLU semantics."""
    out = x_nchw
    for w_oihw, b, stride, pad in layers:
        out = jax.lax.conv_general_dilated(
            out, w_oihw, (stride, stride), [(pad, pad), (pad, pad)],
            dimension_numbers=("NCHW", "OIHW", "NCHW"))
        out = jnp.maximum(out + b[None, :, None, None], 0.0)
    return out


if __name__ == "__main__":
    key = jax.random.PRNGKey(0)
    k_x, k_p = jax.random.split(key)

    # Small shapes consistent with the module: batch=2, channels=4, spatial=16.
    x = jax.random.normal(k_x, (2, 4, 16, 16), jnp.float32)   # NCHW, like PyTorch

    block = ConvReluBlock(k_p, input_shape=(2, 4, 16, 16))
    y = block(x)
    y = jax.block_until_ready(y)

    assert y.shape == (2, 8, 16, 16), y.shape
    y_ref = _reference(x, block.layers)
    max_err = float(jnp.max(jnp.abs(y - y_ref)))
    assert jnp.allclose(y, y_ref, atol=1e-4, rtol=1e-4), max_err

    print("KERNEL_OK")
</pallas_src>

<mosaic_0001>
module attributes {stable_mosaic.version = 11 : i64} {
  func.func @_fused_convrelu_kernel(%arg0: i32, %arg1: memref<2x16x64xf32, #tpu.memory_space<vmem>>, %arg2: memref<3x64x128xf32, #tpu.memory_space<vmem>>, %arg3: memref<1x128xf32, #tpu.memory_space<vmem>>, %arg4: memref<3x128x128xf32, #tpu.memory_space<vmem>>, %arg5: memref<1x128xf32, #tpu.memory_space<vmem>>, %arg6: memref<2x16x128xf32, #tpu.memory_space<vmem>>, %arg7: memref<2x18x64xf32, #tpu.memory_space<vmem>>, %arg8: memref<2x18x128xf32, #tpu.memory_space<vmem>>) attributes {dimension_semantics = [#tpu.dimension_semantics<arbitrary>], iteration_bounds = array<i64: 1>, scalar_prefetch = 0 : i64, scratch_operands = 2 : i64, tpu.core_type = #tpu.core_type<tc>, window_params = [{pipeline_mode = #tpu.pipeline_mode<synchronous>, transform_indices = @transform_0, window_bounds = array<i64: 2, 16, 64>}, {pipeline_mode = #tpu.pipeline_mode<synchronous>, transform_indices = @transform_1, window_bounds = array<i64: 3, 64, 128>}, {pipeline_mode = #tpu.pipeline_mode<synchronous>, transform_indices = @transform_2, window_bounds = array<i64: 1, 128>}, {pipeline_mode = #tpu.pipeline_mode<synchronous>, transform_indices = @transform_3, window_bounds = array<i64: 3, 128, 128>}, {pipeline_mode = #tpu.pipeline_mode<synchronous>, transform_indices = @transform_4, window_bounds = array<i64: 1, 128>}, {pipeline_mode = #tpu.pipeline_mode<synchronous>, transform_indices = @transform_5, window_bounds = array<i64: 2, 16, 128>}]} {
    %cst = arith.constant 0.000000e+00 : f32
    %0 = vector.broadcast %cst : f32 to vector<2x18x64xf32>
    %c0 = arith.constant 0 : index
    %c0_0 = arith.constant 0 : index
    %c0_1 = arith.constant 0 : index
    %1 = vector.load %arg7[%c0, %c0_0, %c0_1] : memref<2x18x64xf32, #tpu.memory_space<vmem>>, vector<2x18x64xf32>
    tpu.vector_store %arg7[%c0, %c0_0, %c0_1], %0 {strides = array<i32>} : memref<2x18x64xf32, #tpu.memory_space<vmem>>, vector<2x18x64xf32>,
    %c0_2 = arith.constant 0 : index
    %c0_3 = arith.constant 0 : index
    %c0_4 = arith.constant 0 : index
    %2 = vector.load %arg1[%c0_2, %c0_3, %c0_4] : memref<2x16x64xf32, #tpu.memory_space<vmem>>, vector<2x16x64xf32>
    %c0_5 = arith.constant 0 : index
    %c1 = arith.constant 1 : index
    %c0_6 = arith.constant 0 : index
    %3 = vector.load %arg7[%c0_5, %c1, %c0_6] : memref<2x18x64xf32, #tpu.memory_space<vmem>>, vector<2x16x64xf32>
    tpu.vector_store %arg7[%c0_5, %c1, %c0_6], %2 {strides = array<i32>} : memref<2x18x64xf32, #tpu.memory_space<vmem>>, vector<2x16x64xf32>,
    %cst_7 = arith.constant 0.000000e+00 : f32
    %4 = vector.broadcast %cst_7 : f32 to vector<32x128xf32>
    %c0_8 = arith.constant 0 : index
    %c0_9 = arith.constant 0 : index
    %c0_10 = arith.constant 0 : index
    %5 = vector.load %arg7[%c0_8, %c0_9, %c0_10] : memref<2x18x64xf32, #tpu.memory_space<vmem>>, vector<2x16x64xf32>
    %6 = vector.shape_cast %5 : vector<2x16x64xf32> to vector<32x64xf32>
    %c0_11 = arith.constant 0 : index
    %c0_12 = arith.constant 0 : index
    %c0_13 = arith.constant 0 : index
    %7 = vector.load %arg2[%c0_11, %c0_12, %c0_13] : memref<3x64x128xf32, #tpu.memory_space<vmem>>, vector<1x64x128xf32>
    %8 = vector.shape_cast %7 : vector<1x64x128xf32> to vector<64x128xf32>
    %cst_14 = arith.constant dense<0.000000e+00> : vector<32x128xf32>
    %9 = tpu.matmul %6, %8, %cst_14 {dimension_numbers = #tpu.dot_dimension_numbers<[1], [0], [0], [1], [0, 0, 1, 1], [], []>} : vector<32x64xf32>, vector<64x128xf32>, vector<32x128xf32> -> vector<32x128xf32>
    %10 = arith.addf %4, %9 : vector<32x128xf32>
    %c0_15 = arith.constant 0 : index
    %c1_16 = arith.constant 1 : index
    %c0_17 = arith.constant 0 : index
    %11 = vector.load %arg7[%c0_15, %c1_16, %c0_17] : memref<2x18x64xf32, #tpu.memory_space<vmem>>, vector<2x16x64xf32>
    %12 = vector.shape_cast %11 : vector<2x16x64xf32> to vector<32x64xf32>
    %c1_18 = arith.constant 1 : index
    %c0_19 = arith.constant 0 : index
    %c0_20 = arith.constant 0 : index
    %13 = vector.load %arg2[%c1_18, %c0_19, %c0_20] : memref<3x64x128xf32, #tpu.memory_space<vmem>>, vector<1x64x128xf32>
    %14 = vector.shape_cast %13 : vector<1x64x128xf32> to vector<64x128xf32>
    %cst_21 = arith.constant dense<0.000000e+00> : vector<32x128xf32>
    %15 = tpu.matmul %12, %14, %cst_21 {dimension_numbers = #tpu.dot_dimension_numbers<[1], [0], [0], [1], [0, 0, 1, 1], [], []>} : vector<32x64xf32>, vector<64x128xf32>, vector<32x128xf32> -> vector<32x128xf32>
    %16 = arith.addf %10, %15 : vector<32x128xf32>
    %c0_22 = arith.constant 0 : index
    %c2 = arith.constant 2 : index
    %c0_23 = arith.constant 0 : index
    %17 = vector.load %arg7[%c0_22, %c2, %c0_23] : memref<2x18x64xf32, #tpu.memory_space<vmem>>, vector<2x16x64xf32>
    %18 = vector.shape_cast %17 : vector<2x16x64xf32> to vector<32x64xf32>
    %c2_24 = arith.constant 2 : index
    %c0_25 = arith.constant 0 : index
    %c0_26 = arith.constant 0 : index
    %19 = vector.load %arg2[%c2_24, %c0_25, %c0_26] : memref<3x64x128xf32, #tpu.memory_space<vmem>>, vector<1x64x128xf32>
    %20 = vector.shape_cast %19 : vector<1x64x128xf32> to vector<64x128xf32>
    %cst_27 = arith.constant dense<0.000000e+00> : vector<32x128xf32>
    %21 = tpu.matmul %18, %20, %cst_27 {dimension_numbers = #tpu.dot_dimension_numbers<[1], [0], [0], [1], [0, 0, 1, 1], [], []>} : vector<32x64xf32>, vector<64x128xf32>, vector<32x128xf32> -> vector<32x128xf32>
    %22 = arith.addf %16, %21 : vector<32x128xf32>
    %c0_28 = arith.constant 0 : index
    %c0_29 = arith.constant 0 : index
    %23 = vector.load %arg3[%c0_28, %c0_29] : memref<1x128xf32, #tpu.memory_space<vmem>>, vector<1x128xf32>
    %24 = vector.broadcast %23 : vector<1x128xf32> to vector<32x128xf32>
    %25 = arith.addf %22, %24 : vector<32x128xf32>
    %cst_30 = arith.constant 0.000000e+00 : f32
    %26 = vector.broadcast %cst_30 : f32 to vector<32x128xf32>
    %27 = arith.maximumf %25, %26 : vector<32x128xf32>
    %cst_31 = arith.constant 0.000000e+00 : f32
    %28 = vector.broadcast %cst_31 : f32 to vector<2x18x128xf32>
    %c0_32 = arith.constant 0 : index
    %c0_33 = arith.constant 0 : index
    %c0_34 = arith.constant 0 : index
    %29 = vector.load %arg8[%c0_32, %c0_33, %c0_34] : memref<2x18x128xf32, #tpu.memory_space<vmem>>, vector<2x18x128xf32>
    tpu.vector_store %arg8[%c0_32, %c0_33, %c0_34], %28 {strides = array<i32>} : memref<2x18x128xf32, #tpu.memory_space<vmem>>, vector<2x18x128xf32>,
    %30 = vector.shape_cast %27 : vector<32x128xf32> to vector<2x16x128xf32>
    %c0_35 = arith.constant 0 : index
    %c1_36 = arith.constant 1 : index
    %c0_37 = arith.constant 0 : index
    %31 = vector.load %arg8[%c0_35, %c1_36, %c0_37] : memref<2x18x128xf32, #tpu.memory_space<vmem>>, vector<2x16x128xf32>
    tpu.vector_store %arg8[%c0_35, %c1_36, %c0_37], %30 {strides = array<i32>} : memref<2x18x128xf32, #tpu.memory_space<vmem>>, vector<2x16x128xf32>,
    %cst_38 = arith.constant 0.000000e+00 : f32
    %32 = vector.broadcast %cst_38 : f32 to vector<32x128xf32>
    %c0_39 = arith.constant 0 : index
    %c0_40 = arith.constant 0 : index
    %c0_41 = arith.constant 0 : index
    %33 = vector.load %arg8[%c0_39, %c0_40, %c0_41] : memref<2x18x128xf32, #tpu.memory_space<vmem>>, vector<2x16x128xf32>
    %34 = vector.shape_cast %33 : vector<2x16x128xf32> to vector<32x128xf32>
    %c0_42 = arith.constant 0 : index
    %c0_43 = arith.constant 0 : index
    %c0_44 = arith.constant 0 : index
    %35 = vector.load %arg4[%c0_42, %c0_43, %c0_44] : memref<3x128x128xf32, #tpu.memory_space<vmem>>, vector<1x128x128xf32>
    %36 = vector.shape_cast %35 : vector<1x128x128xf32> to vector<128x128xf32>
    %cst_45 = arith.constant dense<0.000000e+00> : vector<32x128xf32>
    %37 = tpu.matmul %34, %36, %cst_45 {dimension_numbers = #tpu.dot_dimension_numbers<[1], [0], [0], [1], [0, 0, 1, 1], [], []>} : vector<32x128xf32>, vector<128x128xf32>, vector<32x128xf32> -> vector<32x128xf32>
    %38 = arith.addf %32, %37 : vector<32x128xf32>
    %c0_46 = arith.constant 0 : index
    %c1_47 = arith.constant 1 : index
    %c0_48 = arith.constant 0 : index
    %39 = vector.load %arg8[%c0_46, %c1_47, %c0_48] : memref<2x18x128xf32, #tpu.memory_space<vmem>>, vector<2x16x128xf32>
    %40 = vector.shape_cast %39 : vector<2x16x128xf32> to vector<32x128xf32>
    %c1_49 = arith.constant 1 : index
    %c0_50 = arith.constant 0 : index
    %c0_51 = arith.constant 0 : index
    %41 = vector.load %arg4[%c1_49, %c0_50, %c0_51] : memref<3x128x128xf32, #tpu.memory_space<vmem>>, vector<1x128x128xf32>
    %42 = vector.shape_cast %41 : vector<1x128x128xf32> to vector<128x128xf32>
    %cst_52 = arith.constant dense<0.000000e+00> : vector<32x128xf32>
    %43 = tpu.matmul %40, %42, %cst_52 {dimension_numbers = #tpu.dot_dimension_numbers<[1], [0], [0], [1], [0, 0, 1, 1], [], []>} : vector<32x128xf32>, vector<128x128xf32>, vector<32x128xf32> -> vector<32x128xf32>
    %44 = arith.addf %38, %43 : vector<32x128xf32>
    %c0_53 = arith.constant 0 : index
    %c2_54 = arith.constant 2 : index
    %c0_55 = arith.constant 0 : index
    %45 = vector.load %arg8[%c0_53, %c2_54, %c0_55] : memref<2x18x128xf32, #tpu.memory_space<vmem>>, vector<2x16x128xf32>
    %46 = vector.shape_cast %45 : vector<2x16x128xf32> to vector<32x128xf32>
    %c2_56 = arith.constant 2 : index
    %c0_57 = arith.constant 0 : index
    %c0_58 = arith.constant 0 : index
    %47 = vector.load %arg4[%c2_56, %c0_57, %c0_58] : memref<3x128x128xf32, #tpu.memory_space<vmem>>, vector<1x128x128xf32>
    %48 = vector.shape_cast %47 : vector<1x128x128xf32> to vector<128x128xf32>
    %cst_59 = arith.constant dense<0.000000e+00> : vector<32x128xf32>
    %49 = tpu.matmul %46, %48, %cst_59 {dimension_numbers = #tpu.dot_dimension_numbers<[1], [0], [0], [1], [0, 0, 1, 1], [], []>} : vector<32x128xf32>, vector<128x128xf32>, vector<32x128xf32> -> vector<32x128xf32>
    %50 = arith.addf %44, %49 : vector<32x128xf32>
    %c0_60 = arith.constant 0 : index
    %c0_61 = arith.constant 0 : index
    %51 = vector.load %arg5[%c0_60, %c0_61] : memref<1x128xf32, #tpu.memory_space<vmem>>, vector<1x128xf32>
    %52 = vector.broadcast %51 : vector<1x128xf32> to vector<32x128xf32>
    %53 = arith.addf %50, %52 : vector<32x128xf32>
    %cst_62 = arith.constant 0.000000e+00 : f32
    %54 = vector.broadcast %cst_62 : f32 to vector<32x128xf32>
    %55 = arith.maximumf %53, %54 : vector<32x128xf32>
    %56 = vector.shape_cast %55 : vector<32x128xf32> to vector<2x16x128xf32>
    %c0_63 = arith.constant 0 : index
    %c0_64 = arith.constant 0 : index
    %c0_65 = arith.constant 0 : index
    %57 = vector.load %arg6[%c0_63, %c0_64, %c0_65] : memref<2x16x128xf32, #tpu.memory_space<vmem>>, vector<2x16x128xf32>
    tpu.vector_store %arg6[%c0_63, %c0_64, %c0_65], %56 {strides = array<i32>} : memref<2x16x128xf32, #tpu.memory_space<vmem>>, vector<2x16x128xf32>,
    return
  }
  func.func @transform_0(%arg0: i32) -> (i32, i32, i32) {
    %c0_i32 = arith.constant 0 : i32
    %c0_i32_0 = arith.constant 0 : i32
    %c0_i32_1 = arith.constant 0 : i32
    %c0_i32_2 = arith.constant 0 : i32
    return %c0_i32, %c0_i32_0, %c0_i32_1 : i32, i32, i32
  }
  func.func @transform_1(%arg0: i32) -> (i32, i32, i32) {
    %c0_i32 = arith.constant 0 : i32
    %c0_i32_0 = arith.constant 0 : i32
    %c0_i32_1 = arith.constant 0 : i32
    %c0_i32_2 = arith.constant 0 : i32
    return %c0_i32, %c0_i32_0, %c0_i32_1 : i32, i32, i32
  }
  func.func @transform_2(%arg0: i32) -> (i32, i32) {
    %c0_i32 = arith.constant 0 : i32
    %c0_i32_0 = arith.constant 0 : i32
    %c0_i32_1 = arith.constant 0 : i32
    return %c0_i32, %c0_i32_0 : i32, i32
  }
  func.func @transform_3(%arg0: i32) -> (i32, i32, i32) {
    %c0_i32 = arith.constant 0 : i32
    %c0_i32_0 = arith.constant 0 : i32
    %c0_i32_1 = arith.constant 0 : i32
    %c0_i32_2 = arith.constant 0 : i32
    return %c0_i32, %c0_i32_0, %c0_i32_1 : i32, i32, i32
  }
  func.func @transform_4(%arg0: i32) -> (i32, i32) {
    %c0_i32 = arith.constant 0 : i32
    %c0_i32_0 = arith.constant 0 : i32
    %c0_i32_1 = arith.constant 0 : i32
    return %c0_i32, %c0_i32_0 : i32, i32
  }
  func.func @transform_5(%arg0: i32) -> (i32, i32, i32) {
    %c0_i32 = arith.constant 0 : i32
    %c0_i32_0 = arith.constant 0 : i32
    %c0_i32_1 = arith.constant 0 : i32
    %c0_i32_2 = arith.constant 0 : i32
    return %c0_i32, %c0_i32_0, %c0_i32_1 : i32, i32, i32
  }
}

</mosaic_0001>

<bundles_post_ra>
// kernel: tpu_custom_call.1
= control target key start
LH: loop header
LB: loop body
LE: loop exit
PB: predicated region body
PF: predicated region fallthrough
CT: control target
= control target key end

     0   :  { %10 = vsyncpa [#allocation5], 0  ;;  %s1475_s0 = inlined_call_operand.hbm [shape: f32[2,16,64], index: 0, kind: input, shape index: {}]   ;;  %s1476_s1 = inlined_call_operand.hbm [shape: f32[3,64,128], index: 1, kind: input, shape index: {}]   ;;  %s1477_s2 = inlined_call_operand.vmem [shape: f32[1,128], index: 2, kind: input, shape index: {}]   ;;  %s1478_s3 = inlined_call_operand.hbm [shape: f32[3,128,128], index: 3, kind: input, shape index: {}]   ;;  %s1479_s4 = inlined_call_operand.vmem [shape: f32[1,128], index: 4, kind: input, shape index: {}]   ;;  %s1480_s5 = inlined_call_operand.hbm [shape: f32[2,16,128], index: 5, kind: output, shape index: {}]  }
   0x1   :  { %11 = vsyncpa [#allocation8], 0 }
   0x2   :  { %12 = vsyncpa [#allocation6], 0  ;;  %s1345_s18 = smov [#allocation7]   ;;  %s1346_s20 = smov [#allocation4]  }
   0x3   :  { %s30_s19 = sshll.u32 %s1345_s18, 4  ;;  %s18_s21 = sshll.u32 %s1346_s20, 4  ;;  %s31_s19 = int_to_ptr.vmem [resolvable:$true] %s30_s19  ;;  %s1382_s21 = int_to_ptr.vmem [resolvable:$true] %s18_s21 }
   0x4   :  { %s1251_s24 = scalar_lea.hbm %s1476_s1, 3072 }
   0x5   :  { %p1252_p0 = scmp.ne.s32.totalorder %s1476_s1, %s1251_s24  ;;  %p1255_p1 = scmp.lt.u32.totalorder %s1251_s24, %s1476_s1 }
   0x7   :  { %p1257_p2 = pnand %p1255_p1, %p1252_p0 }
   0x9   :  { %1260 = shalt.err (!%p1257_p2)
}
   0xa   :  { %s1261_s29 = scalar_lea.vmem %s31_s19, 3072  ;;  %p1266_p4 = scmp.lt.s32.totalorder %s31_s19, %s31_s19 }
   0xb   :  { %p1262_p3 = scmp.ne.s32.totalorder %s31_s19, %s1261_s29  ;;  %p1267_p5 = scmp.lt.s32.totalorder %s1261_s29, %s1261_s29 }
   0xd   :  { %p1268_p6 = por %p1267_p5, %p1266_p4 }
   0xf   :  { %p1269_p7 = pnand %p1268_p6, %p1262_p3 }
  0x11   :  { %1272 = shalt.err (!%p1269_p7)
}
  0x12   :  { %s1347_s30 = smov 128   ;;  %s1348_s6 = smov 8  }
  0x13   :  { %36 = dma.hbm_to_vmem [thread:$0]  %s1476_s1, 3072, %s31_s19, [#allocation8], %s1347_s30, %s1347_s30, %s1348_s6  }
  0x14   :  { %s1273_s11 = scalar_lea.hbm %s1475_s0, 512 }
  0x15   :  { %p1274_p8 = scmp.ne.s32.totalorder %s1475_s0, %s1273_s11  ;;  %p1277_p9 = scmp.lt.u32.totalorder %s1273_s11, %s1475_s0 }
  0x17   :  { %p1279_p10 = pnand %p1277_p9, %p1274_p8 }
  0x19   :  { %1282 = shalt.err (!%p1279_p10)
}
  0x1a   :  { %s1283_s16 = scalar_lea.vmem %s1382_s21, 512  ;;  %p1288_p12 = scmp.lt.s32.totalorder %s1382_s21, %s1382_s21 }
  0x1b   :  { %p1284_p11 = scmp.ne.s32.totalorder %s1382_s21, %s1283_s16  ;;  %p1289_p13 = scmp.lt.s32.totalorder %s1283_s16, %s1283_s16 }
  0x1d   :  { %p1290_p0 = por %p1289_p13, %p1288_p12 }
  0x1f   :  { %p1291_p1 = pnand %p1290_p0, %p1284_p11 }
  0x21   :  { %1294 = shalt.err (!%p1291_p1)
}
  0x22   :  { %24 = dma.hbm_to_vmem [thread:$0]  %s1475_s0, 512, %s1382_s21, [#allocation5], %s1347_s30, %s1347_s30, %s1348_s6  }
  0x23   :  { %s1349_s18 = smov [#allocation9]   ;;  %s1295_s23 = scalar_lea.hbm %s1478_s3, 6144 }
  0x24   :  { %s44_s19 = sshll.u32 %s1349_s18, 4  ;;  %p1296_p2 = scmp.ne.s32.totalorder %s1478_s3, %s1295_s23  ;;  %s45_s19 = int_to_ptr.vmem [resolvable:$true] %s44_s19 }
  0x25   :  { %p1299_p3 = scmp.lt.u32.totalorder %s1295_s23, %s1478_s3 }
  0x27   :  { %p1301_p4 = pnand %p1299_p3, %p1296_p2 }
  0x29   :  { %1304 = shalt.err (!%p1301_p4)
}
  0x2a   :  { %s1305_s28 = scalar_lea.vmem %s45_s19, 6144  ;;  %p1310_p6 = scmp.lt.s32.totalorder %s45_s19, %s45_s19 }
  0x2b   :  { %p1306_p5 = scmp.ne.s32.totalorder %s45_s19, %s1305_s28  ;;  %p1311_p7 = scmp.lt.s32.totalorder %s1305_s28, %s1305_s28 }
  0x2d   :  { %p1312_p8 = por %p1311_p7, %p1310_p6 }
  0x2f   :  { %p1313_p9 = pnand %p1312_p8, %p1306_p5 }
  0x31   :  { %1316 = shalt.err (!%p1313_p9)
}
  0x32   :  { %50 = dma.hbm_to_vmem [thread:$0]  %s1478_s3, 6144, %s45_s19, [#allocation8], %s1347_s30, %s1347_s30, %s1348_s6  }
  0x33   :  { %1339 = dma.done.wait [#allocation5], 512  }
  0x34   :  { %1340 = vsyncadd [#allocation5], 4294966784 }
  0x35   :  { %1341 = dma.done.wait [#allocation8], 9216  }
  0x36   :  { %1342 = vsyncadd [#allocation8], 4294958080  ;;  %vm62_vm0 = vcmask 523264   ;;  %vm65_vm1 = vcmask 517120   ;;  %v1350_v0 = vmov 0.0   ;;  %v95_v1 = vld [vmem:[#allocation7 + $0x40] sm:$0xff] }
  0x37   :  { %63 = vst.msk [vmem:[#allocation2] sm:$0xff] %vm62_vm0, %v1350_v0  ;;  %64 = vst.msk [vmem:[#allocation2 + $0x8] sm:$0xff] %vm62_vm0, %v1350_v0  ;;  %v96_v2 = vld [vmem:[#allocation7 + $0x48] sm:$0xff]  ;;  %v97_v3 = vld [vmem:[#allocation7 + $0x50] sm:$0xff]  ;;  %s1351_s8 = smov [#allocation10]  }
  0x38   :  { %67 = vst.msk [vmem:[#allocation2 + $0x18] sm:$0xff] %vm62_vm0, %v1350_v0  ;;  %68 = vst.msk [vmem:[#allocation2 + $0x20] sm:$0xff] %vm62_vm0, %v1350_v0  ;;  %v1084_v4 = vpack.c.bf16 %v96_v2, %v95_v1  ;;  %v98_v5 = vld [vmem:[#allocation7 + $0x58] sm:$0xff]  ;;  %v99_v7 = vld [vmem:[#allocation7 + $0x60] sm:$0xff]  ;;  %s781_s9 = sshll.u32 %s1351_s8, 4  ;;  %s782_s9 = int_to_ptr.vmem [resolvable:$true] %s781_s9 }
  0x39   :  { %426 = vst [vmem:[#allocation3] sm:$0xff] %v1350_v0  ;;  %427 = vst [vmem:[#allocation3 + $0x8] sm:$0xff] %v1350_v0  ;;  %v1088_v6 = vpack.c.bf16 %v98_v5, %v97_v3  ;;  %v100_v8 = vld [vmem:[#allocation7 + $0x68] sm:$0xff]  ;;  %v70_v9 = vld [vmem:[#allocation4] sm:$0xff]  ;;  %p1322_p11 = scmp.lt.s32.totalorder %s782_s9, %s782_s9 }
  0x3a   :  { %428 = vst [vmem:[#allocation3 + $0x10] sm:$0x3] %v1350_v0  ;;  %429 = vst [vmem:[#allocation3 + $0x18] sm:$0xff] %v1350_v0  ;;  %1085 = vmatprep.subr.bf16.mxu0 %v1084_v4  ;;  %v71_v10 = vld [vmem:[#allocation4 + $0x8] sm:$0xff]  ;;  %v1092_v11 = vpack.c.bf16 %v100_v8, %v99_v7  ;;  %v72_v12 = vld [vmem:[#allocation4 + $0x10] sm:$0xff] }
  0x3b   :  { %430 = vst [vmem:[#allocation3 + $0x20] sm:$0xff] %v1350_v0  ;;  %431 = vst [vmem:[#allocation3 + $0x28] sm:$0x3] %v1350_v0  ;;  %1087 = vmatpush3.bf16.msra.mxu0 %v1084_v4  ;;  %v101_v13 = vld [vmem:[#allocation7 + $0x70] sm:$0xff]  ;;  %v102_v14 = vld [vmem:[#allocation7 + $0x78] sm:$0xff] }
  0x3c   :  { %66 = vst.msk [vmem:[#allocation2 + $0x10] sm:$0x3] %vm65_vm1, %v1350_v0  ;;  %69 = vst.msk [vmem:[#allocation2 + $0x28] sm:$0x3] %vm65_vm1, %v1350_v0  ;;  %1089 = vmatprep.subr.bf16.mxu0 %v1088_v6  ;;  %v73_v15 = vld [vmem:[#allocation4 + $0x18] sm:$0xff]  ;;  %v1096_v16 = vpack.c.bf16 %v102_v14, %v101_v13  ;;  %v440_v17 = vld [vmem:[#allocation9] sm:$0xff] }
  0x3d   :  { %74 = vst.msk [vmem:[#allocation2 + $0x1] sm:$0xff] %vm62_vm0, %v70_v9  ;;  %75 = vst.msk [vmem:[#allocation2 + $0x9] sm:$0xff] %vm62_vm0, %v71_v10  ;;  %v441_v18 = vld [vmem:[#allocation9 + $0x8] sm:$0xff]  ;;  %v82_v20 = vld [vmem:[#allocation7] sm:$0xff] }
  0x3e   :  { %76 = vst.msk [vmem:[#allocation2 + $0x19] sm:$0xff] %vm62_vm0, %v72_v12  ;;  %77 = vst.msk [vmem:[#allocation2 + $0x21] sm:$0xff] %vm62_vm0, %v73_v15  ;;  %v83_v21 = vld [vmem:[#allocation7 + $0x8] sm:$0xff]  ;;  %v1164_v22 = vpack.c.bf16 %v441_v18, %v440_v17  ;;  %v442_v23 = vld [vmem:[#allocation9 + $0x10] sm:$0xff] }
  0x3f   :  { %1091 = vmatpush3.bf16.msra.mxu0 %v1088_v6  ;;  %v1100_v24 = vpack.c.bf16 %v83_v21, %v82_v20  ;;  %v443_v25 = vld [vmem:[#allocation9 + $0x18] sm:$0xff]  ;;  %v84_v26 = vld [vmem:[#allocation7 + $0x10] sm:$0xff]  ;;  %v444_v30 = vld [vmem:[#allocation9 + $0x20] sm:$0xff] }
  0x40   :  { %1093 = vmatprep.subr.bf16.mxu0 %v1092_v11  ;;  %1165 = vmatprep.subr.bf16.mxu1 %v1164_v22  ;;  %v85_v27 = vld [vmem:[#allocation7 + $0x18] sm:$0xff]  ;;  %v1168_v28 = vpack.c.bf16 %v443_v25, %v442_v23  ;;  %v445_v31 = vld [vmem:[#allocation9 + $0x28] sm:$0xff]  ;;  %v446_v35 = vld [vmem:[#allocation9 + $0x30] sm:$0xff] }
  0x41   :  { %1167 = vmatpush3.bf16.msra.mxu1 %v1164_v22  ;;  %v1104_v32 = vpack.c.bf16 %v85_v27, %v84_v26  ;;  %v1172_v34 = vpack.c.bf16 %v445_v31, %v444_v30  ;;  %v447_v36 = vld [vmem:[#allocation9 + $0x38] sm:$0xff]  ;;  %v86_v37 = vld [vmem:[#allocation7 + $0x20] sm:$0xff]  ;;  %v87_v38 = vld [vmem:[#allocation7 + $0x28] sm:$0xff] }
  0x42   :  { %1169 = vmatprep.subr.bf16.mxu1 %v1168_v28  ;;  %v1176_v39 = vpack.c.bf16 %v447_v36, %v446_v35  ;;  %v448_v40 = vld [vmem:[#allocation9 + $0x40] sm:$0xff]  ;;  %v449_v41 = vld [vmem:[#allocation9 + $0x48] sm:$0xff]  ;;  %v1108_v43 = vpack.c.bf16 %v87_v38, %v86_v37  ;;  %v88_v45 = vld [vmem:[#allocation7 + $0x30] sm:$0xff] }
  0x43   :  { %1095 = vmatpush3.bf16.msra.mxu0 %v1092_v11  ;;  %v89_v46 = vld [vmem:[#allocation7 + $0x38] sm:$0xff]  ;;  %v1180_v47 = vpack.c.bf16 %v449_v41, %v448_v40  ;;  %v302_v49 = vld [vmem:[#allocation7 + $0x80] sm:$0xff]  ;;  %v303_v50 = vld [vmem:[#allocation7 + $0x88] sm:$0xff] }
  0x44   :  { %v90_v19 = vld [vmem:[#allocation2 + $0x1] sm:$0xff]  ;;  %1097 = vmatprep.subr.bf16.mxu0 %v1096_v16  ;;  %v91_v29 = vld [vmem:[#allocation2 + $0x9] sm:$0xff]  ;;  %v1112_v48 = vpack.c.bf16 %v89_v46, %v88_v45  ;;  %v1116_v51 = vpack.c.bf16 %v303_v50, %v302_v49  ;;  %v305_v53 = vld [vmem:[#allocation7 + $0x98] sm:$0xff] }
  0x45   :  { %920 = vmatprep.mubr.msk.f32.mxu0 %vm62_vm0, %v90_v19  ;;  %v92_v33 = vld [vmem:[#allocation2 + $0x19] sm:$0xff]  ;;  %1171 = vmatpush3.bf16.msra.mxu1 %v1168_v28  ;;  %v93_v42 = vld [vmem:[#allocation2 + $0x21] sm:$0xff]  ;;  %v304_v52 = vld [vmem:[#allocation7 + $0x90] sm:$0xff] }
  0x46   :  { %1173 = vmatprep.subr.bf16.mxu1 %v1172_v34  ;;  %v78_v44 = vld [vmem:[#allocation2] sm:$0xff]  ;;  %v79_v54 = vld [vmem:[#allocation2 + $0x8] sm:$0xff]  ;;  %v1120_v55 = vpack.c.bf16 %v305_v53, %v304_v52  ;;  %v80_v56 = vld [vmem:[#allocation2 + $0x18] sm:$0xff] }
  0x47   :  { %1099 = vmatpush3.bf16.msra.mxu0 %v1096_v16  ;;  %v306_v57 = vld [vmem:[#allocation7 + $0xa0] sm:$0xff]  ;;  %v307_v58 = vld [vmem:[#allocation7 + $0xa8] sm:$0xff]  ;;  %v308_v62 = vld [vmem:[#allocation7 + $0xb0] sm:$0xff] }
  0x48   :  { %1101 = vmatprep.subr.bf16.mxu0 %v1100_v24  ;;  %v81_v59 = vld [vmem:[#allocation2 + $0x20] sm:$0xff]  ;;  %v1124_v60 = vpack.c.bf16 %v307_v58, %v306_v57  ;;  %v309_v63 = vld [vmem:[#allocation7 + $0xb8] sm:$0xff]  ;;  %v462_v2 = vld [vmem:[#allocation9 + $0x88] sm:$0xff] }
  0x49   :  { %1175 = vmatpush3.bf16.msra.mxu1 %v1172_v34  ;;  %v297_v61 = vld [vmem:[#allocation2 + $0x2] sm:$0xff]  ;;  %v1128_v0 = vpack.c.bf16 %v309_v63, %v308_v62  ;;  %v463_v4 = vld [vmem:[#allocation9 + $0x90] sm:$0xff]  ;;  %v464_v5 = vld [vmem:[#allocation9 + $0x98] sm:$0xff] }
  0x4a   :  { %921 = vmatmul.mubr.msk.f32.vlgmr.msra.gmra.mrb[0].mxu0 %vm62_vm0, %v91_v29  ;;  %1177 = vmatprep.subr.bf16.mxu1 %v1176_v39  ;;  %v461_v1 = vld [vmem:[#allocation9 + $0x80] sm:$0xff]  ;;  %v298_v6 = vld [vmem:[#allocation2 + $0xa] sm:$0xff]  ;;  %v1136_v8 = vpack.c.bf16 %v464_v5, %v463_v4  ;;  %v468_v14 = vld [vmem:[#allocation9 + $0xb8] sm:$0xff] }
  0x4b   :  { %1103 = vmatpush3.bf16.msra.mxu0 %v1100_v24  ;;  %923 = vmatprep.mubr.msk.f32.mxu0 %vm62_vm0, %v92_v33  ;;  %v1132_v3 = vpack.c.bf16 %v462_v2, %v461_v1  ;;  %v299_v7 = vld [vmem:[#allocation2 + $0x1a] sm:$0xff]  ;;  %v466_v10 = vld [vmem:[#allocation9 + $0xa8] sm:$0xff]  ;;  %v467_v13 = vld [vmem:[#allocation9 + $0xb0] sm:$0xff] }
  0x4c   :  { %1105 = vmatprep.subr.bf16.mxu0 %v1104_v32  ;;  %v465_v9 = vld [vmem:[#allocation9 + $0xa0] sm:$0xff]  ;;  %v1144_v15 = vpack.c.bf16 %v468_v14, %v467_v13  ;;  %v470_v17 = vld [vmem:[#allocation9 + $0xc8] sm:$0xff]  ;;  %v471_v19 = vld [vmem:[#allocation9 + $0xd0] sm:$0xff] }
  0x4d   :  { %1179 = vmatpush3.bf16.msra.mxu1 %v1176_v39  ;;  %v300_v11 = vld [vmem:[#allocation2 + $0x22] sm:$0xff]  ;;  %v1140_v12 = vpack.c.bf16 %v466_v10, %v465_v9  ;;  %v472_v20 = vld [vmem:[#allocation9 + $0xd8] sm:$0xff]  ;;  %v450_v25 = vld [vmem:[#allocation9 + $0x50] sm:$0xff] }
  0x4e   :  { %924 = vmatmul.mubr.msk.f32.gmra.mrb[2].mxu0 %vm62_vm0, %v93_v42  ;;  %1181 = vmatprep.subr.bf16.mxu1 %v1180_v47  ;;  %v469_v16 = vld [vmem:[#allocation9 + $0xc0] sm:$0xff]  ;;  %v1152_v21 = vpack.c.bf16 %v472_v20, %v471_v19  ;;  %v474_v23 = vld [vmem:[#allocation9 + $0xe8] sm:$0xff]  ;;  %v451_v26 = vld [vmem:[#allocation9 + $0x58] sm:$0xff] }
  0x4f   :  { %1107 = vmatpush3.bf16.msra.mxu0 %v1104_v32  ;;  %942 = vmatprep.mubr.msk.f32.mxu0 %vm62_vm0, %v78_v44  ;;  %v1148_v18 = vpack.c.bf16 %v470_v17, %v469_v16  ;;  %v473_v22 = vld [vmem:[#allocation9 + $0xe0] sm:$0xff]  ;;  %v1184_v27 = vpack.c.bf16 %v451_v26, %v450_v25  ;;  %v475_v28 = vld [vmem:[#allocation9 + $0xf0] sm:$0xff]  ;;  %v476_v29 = vld [vmem:[#allocation9 + $0xf8] sm:$0xff] }
  0x50   :  { %1109 = vmatprep.subr.bf16.mxu0 %v1108_v43  ;;  %v1156_v24 = vpack.c.bf16 %v474_v23, %v473_v22  ;;  %v1160_v30 = vpack.c.bf16 %v476_v29, %v475_v28  ;;  %v452_v31 = vld [vmem:[#allocation9 + $0x60] sm:$0xff]  ;;  %v453_v32 = vld [vmem:[#allocation9 + $0x68] sm:$0xff]  ;;  %v454_v34 = vld [vmem:[#allocation9 + $0x70] sm:$0xff] }
  0x51   :  { %1183 = vmatpush3.bf16.msra.mxu1 %v1180_v47  ;;  %v1188_v33 = vpack.c.bf16 %v453_v32, %v452_v31  ;;  %v455_v35 = vld [vmem:[#allocation9 + $0x78] sm:$0xff]  ;;  %v652_v37 = vld [vmem:[#allocation9 + $0x100] sm:$0xff]  ;;  %v653_v38 = vld [vmem:[#allocation9 + $0x108] sm:$0xff] }
  0x52   :  { %1185 = vmatprep.subr.bf16.mxu1 %v1184_v27  ;;  %v1192_v36 = vpack.c.bf16 %v455_v35, %v454_v34  ;;  %v1196_v39 = vpack.c.bf16 %v653_v38, %v652_v37  ;;  %v806_v40 = vld [vmem:[%s1477_s2] ss:$0 sm:$0xff]  ;;  %v654_v53 = vld [vmem:[#allocation9 + $0x110] sm:$0xff]  ;;  %v661_v4 = vld [vmem:[#allocation9 + $0x148] sm:$0xff] }
  0x53   :  { %1111 = vmatpush3.bf16.msra.mxu0 %v1108_v43  ;;  %v656_v58 = vld [vmem:[#allocation9 + $0x120] sm:$0xff]  ;;  %v658_v63 = vld [vmem:[#allocation9 + $0x130] sm:$0xff]  ;;  %v665_v10 = vld [vmem:[#allocation9 + $0x168] sm:$0xff] }
  0x54   :  { %1113 = vmatprep.subr.bf16.mxu0 %v1112_v48  ;;  %v664_v9 = vld [vmem:[#allocation9 + $0x160] sm:$0xff]  ;;  %v667_v13 = vld [vmem:[#allocation9 + $0x178] sm:$0xff] }
  0x55   :  { %1187 = vmatpush3.bf16.msra.mxu1 %v1184_v27  ;;  %v807_v23 = vld [vmem:[%s1479_s4] ss:$0 sm:$0xff]  ;;  %s1317_s4 = scalar_lea.vmem %s782_s9, 512 }
  0x56   :  { %1189 = vmatprep.subr.bf16.mxu1 %v1188_v33  ;;  %p1318_p10 = scmp.ne.s32.totalorder %s782_s9, %s1317_s4  ;;  %p1323_p12 = scmp.lt.s32.totalorder %s1317_s4, %s1317_s4 }
  0x57   :  { %1115 = vmatpush3.bf16.msra.mxu0 %v1112_v48 }
  0x58   :  { %1117 = vmatprep.subr.bf16.mxu0 %v1116_v51  ;;  %p1324_p13 = por %p1323_p12, %p1322_p11 }
  0x59   :  { %1191 = vmatpush3.bf16.msra.mxu1 %v1188_v33 }
  0x5a   :  { %943 = vmatmul.mubr.msk.f32.vlgmr.msra.gmra.mrb[0].mxu0 %vm62_vm0, %v79_v54  ;;  %1193 = vmatprep.subr.bf16.mxu1 %v1192_v36  ;;  %v655_v54 = vld [vmem:[#allocation9 + $0x118] sm:$0xff]  ;;  %p1325_p0 = pnand %p1324_p13, %p1318_p10 }
  0x5b   :  { %1119 = vmatpush3.bf16.msra.mxu0 %v1116_v51  ;;  %945 = vmatprep.mubr.msk.f32.mxu0 %vm62_vm0, %v80_v56  ;;  %v1200_v57 = vpack.c.bf16 %v655_v54, %v654_v53 }
  0x5c   :  { %1121 = vmatprep.subr.bf16.mxu0 %v1120_v55 }
  0x5d   :  { %1195 = vmatpush3.bf16.msra.mxu1 %v1192_v36 }
  0x5e   :  { %946 = vmatmul.mubr.msk.f32.gmra.mrb[2].mxu0 %vm62_vm0, %v81_v59  ;;  %1197 = vmatprep.subr.bf16.mxu1 %v1196_v39  ;;  %v657_v59 = vld [vmem:[#allocation9 + $0x128] sm:$0xff] }
  0x5f   :  { %1123 = vmatpush3.bf16.msra.mxu0 %v1120_v55  ;;  %964 = vmatprep.mubr.msk.f32.mxu0 %vm62_vm0, %v297_v61  ;;  %v1204_v62 = vpack.c.bf16 %v657_v59, %v656_v58 }
  0x60   :  { %1125 = vmatprep.subr.bf16.mxu0 %v1124_v60 }
  0x63   :  { %1127 = vmatpush3.bf16.msra.mxu0 %v1124_v60 }
  0x64   :  { %1129 = vmatprep.subr.bf16.mxu0 %v1128_v0 }
  0x67   :  { %1131 = vmatpush3.bf16.msra.mxu0 %v1128_v0  ;;  %v659_v0 = vld [vmem:[#allocation9 + $0x138] sm:$0xff] }
  0x68   :  { %1133 = vmatprep.subr.bf16.mxu0 %v1132_v3  ;;  %v1208_v2 = vpack.c.bf16 %v659_v0, %v658_v63 }
  0x6a   :  { %965 = vmatmul.mubr.msk.f32.vlgmr.msra.gmra.mrb[0].mxu0 %vm62_vm0, %v298_v6  ;;  %v662_v6 = vld [vmem:[#allocation9 + $0x150] sm:$0xff] }
  0x6b   :  { %967 = vmatprep.mubr.msk.f32.mxu0 %vm62_vm0, %v299_v7  ;;  %1135 = vmatpush3.bf16.msra.mxu0 %v1132_v3  ;;  %v660_v3 = vld [vmem:[#allocation9 + $0x140] sm:$0xff]  ;;  %v663_v7 = vld [vmem:[#allocation9 + $0x158] sm:$0xff] }
  0x6c   :  { %1137 = vmatprep.subr.bf16.mxu0 %v1136_v8  ;;  %v1212_v5 = vpack.c.bf16 %v661_v4, %v660_v3 }
  0x6e   :  { %968 = vmatmul.mubr.msk.f32.gmra.mrb[2].mxu0 %vm62_vm0, %v300_v11  ;;  %v1220_v11 = vpack.c.bf16 %v665_v10, %v664_v9 }
  0x6f   :  { %1139 = vmatpush3.bf16.msra.mxu0 %v1136_v8  ;;  %v1216_v8 = vpack.c.bf16 %v663_v7, %v662_v6 }
  0x70   :  { %1141 = vmatprep.subr.bf16.mxu0 %v1140_v12 }
  0x73   :  { %1143 = vmatpush3.bf16.msra.mxu0 %v1140_v12  ;;  %v666_v12 = vld [vmem:[#allocation9 + $0x170] sm:$0xff] }
  0x74   :  { %1145 = vmatprep.subr.bf16.mxu0 %v1144_v15  ;;  %v1224_v14 = vpack.c.bf16 %v667_v13, %v666_v12 }
  0x77   :  { %1147 = vmatpush3.bf16.msra.mxu0 %v1144_v15 }
  0x78   :  { %1149 = vmatprep.subr.bf16.mxu0 %v1148_v18 }
  0x7b   :  { %1151 = vmatpush3.bf16.msra.mxu0 %v1148_v18 }
  0x7c   :  { %1153 = vmatprep.subr.bf16.mxu0 %v1152_v21 }
  0x7f   :  { %1155 = vmatpush3.bf16.msra.mxu0 %v1152_v21 }
  0x80   :  { %1157 = vmatprep.subr.bf16.mxu0 %v1156_v24 }
  0x83   :  { %1159 = vmatpush3.bf16.msra.mxu0 %v1156_v24 }
  0x84   :  { %1161 = vmatprep.subr.bf16.mxu0 %v1160_v30 }
  0x87   :  { %1163 = vmatpush3.bf16.msra.mxu0 %v1160_v30 }
 0x13d   :  { %v966_v41 = vpop.f32.mrb[0].mxu0 }
 0x13e   :  { %v419_v42 = vadd.f32 %v966_v41, %v806_v40  ;;  %v388_v43 = vpop.f32.mrb[1].mxu0 }
 0x13f   :  { %v418_v44 = vadd.f32 %v806_v40, %v388_v43 }
 0x140   :  { %v423_v45 = vmax.f32 %v419_v42, 0.0 }
 0x141   :  { %v422_v46 = vmax.f32 %v418_v44, 0.0  ;;  %v969_v47 = vpop.f32.mrb[2].mxu0 }
 0x142   :  { %433 = vst [vmem:[#allocation3 + $0x9] sm:$0xff] %v423_v45  ;;  %v421_v48 = vadd.f32 %v969_v47, %v806_v40  ;;  %v398_v49 = vpop.f32.mrb[3].mxu0 }
 0x143   :  { %432 = vst [vmem:[#allocation3 + $0x1] sm:$0xff] %v422_v46  ;;  %v420_v50 = vadd.f32 %v806_v40, %v398_v49  ;;  %1002 = vmatprep.mubr.f32.mxu0 %v422_v46 }
 0x144   :  { %v425_v51 = vmax.f32 %v421_v48, 0.0  ;;  %1003 = vmatmul.mubr.f32.vlgmr.msra.gmra.mrb[4].mxu0 %v423_v45 }
 0x145   :  { %v424_v52 = vmax.f32 %v420_v50, 0.0 }
 0x146   :  { %435 = vst [vmem:[#allocation3 + $0x21] sm:$0xff] %v425_v51 }
 0x147   :  { %434 = vst [vmem:[#allocation3 + $0x19] sm:$0xff] %v424_v52  ;;  %1005 = vmatprep.mubr.f32.mxu0 %v424_v52 }
 0x148   :  { %1006 = vmatmul.mubr.f32.gmra.mrb[6].mxu0 %v425_v51 }
 0x149   :  { %v648_v15 = vld [vmem:[#allocation3 + $0xa] sm:$0xff] }
 0x14a   :  { %v436_v55 = vld [vmem:[#allocation3] sm:$0xff]  ;;  %v437_v56 = vld [vmem:[#allocation3 + $0x8] sm:$0xff] }
 0x14b   :  { %1040 = vmatprep.mubr.f32.mxu1 %v436_v55  ;;  %v647_v1 = vld [vmem:[#allocation3 + $0x2] sm:$0xff] }
 0x14c   :  { %1041 = vmatmul.mubr.f32.vlgmr.msra.gmra.mrb[0].mxu1 %v437_v56 }
 0x14d   :  { %1199 = vmatpush3.bf16.msra.mxu1 %v1196_v39  ;;  %v650_v17 = vld [vmem:[#allocation3 + $0x22] sm:$0xff] }
 0x14e   :  { %v438_v60 = vld [vmem:[#allocation3 + $0x18] sm:$0xff]  ;;  %1201 = vmatprep.subr.bf16.mxu1 %v1200_v57  ;;  %v439_v61 = vld [vmem:[#allocation3 + $0x20] sm:$0xff] }
 0x14f   :  { %1043 = vmatprep.mubr.f32.mxu1 %v438_v60  ;;  %v649_v16 = vld [vmem:[#allocation3 + $0x1a] sm:$0xff] }
 0x150   :  { %1044 = vmatmul.mubr.f32.gmra.mrb[2].mxu1 %v439_v61 }
 0x151   :  { %1203 = vmatpush3.bf16.msra.mxu1 %v1200_v57  ;;  %1078 = vmatprep.mubr.f32.mxu1 %v647_v1 }
 0x152   :  { %1205 = vmatprep.subr.bf16.mxu1 %v1204_v62 }
 0x155   :  { %1207 = vmatpush3.bf16.msra.mxu1 %v1204_v62 }
 0x156   :  { %1209 = vmatprep.subr.bf16.mxu1 %v1208_v2 }
 0x159   :  { %1211 = vmatpush3.bf16.msra.mxu1 %v1208_v2 }
 0x15a   :  { %1213 = vmatprep.subr.bf16.mxu1 %v1212_v5 }
 0x15d   :  { %1215 = vmatpush3.bf16.msra.mxu1 %v1212_v5 }
 0x15e   :  { %1217 = vmatprep.subr.bf16.mxu1 %v1216_v8 }
 0x161   :  { %1219 = vmatpush3.bf16.msra.mxu1 %v1216_v8 }
 0x162   :  { %1221 = vmatprep.subr.bf16.mxu1 %v1220_v11 }
 0x165   :  { %1223 = vmatpush3.bf16.msra.mxu1 %v1220_v11 }
 0x166   :  { %1225 = vmatprep.subr.bf16.mxu1 %v1224_v14 }
 0x169   :  { %1227 = vmatpush3.bf16.msra.mxu1 %v1224_v14 }
 0x16c   :  { %1079 = vmatmul.mubr.f32.vlgmr.msra.gmra.mrb[0].mxu1 %v648_v15 }
 0x16d   :  { %1081 = vmatprep.mubr.f32.mxu1 %v649_v16 }
 0x170   :  { %1082 = vmatmul.mubr.f32.gmra.mrb[2].mxu1 %v650_v17 }
 0x217   :  { %v1004_v18 = vpop.f32.mrb[4].mxu0 }
 0x218   :  { %v543_v19 = vpop.f32.mrb[5].mxu0 }
 0x21b   :  { %v1007_v20 = vpop.f32.mrb[6].mxu0 }
 0x21c   :  { %v553_v21 = vpop.f32.mrb[7].mxu0 }
 0x23f   :  { %v1080_v22 = vpop.f32.mrb[0].mxu1 }
 0x240   :  { %v1228_v24 = vadd.f32 %v1080_v22, %v1004_v18  ;;  %v734_v25 = vpop.f32.mrb[1].mxu1 }
 0x241   :  { %v1229_v26 = vadd.f32 %v734_v25, %v543_v19 }
 0x242   :  { %v765_v27 = vadd.f32 %v1228_v24, %v807_v23 }
 0x243   :  { %v764_v28 = vadd.f32 %v1229_v26, %v807_v23  ;;  %v1083_v29 = vpop.f32.mrb[2].mxu1 }
 0x244   :  { %v769_v30 = vmax.f32 %v765_v27, 0.0  ;;  %v1230_v31 = vadd.f32 %v1083_v29, %v1007_v20  ;;  %v744_v32 = vpop.f32.mrb[3].mxu1 }
 0x245   :  { %v768_v33 = vmax.f32 %v764_v28, 0.0  ;;  %v1231_v34 = vadd.f32 %v744_v32, %v553_v21 }
 0x246   :  { %773 = vst [vmem:[#allocation10 + $0x8] sm:$0xff] %v769_v30  ;;  %v767_v35 = vadd.f32 %v1230_v31, %v807_v23 }
 0x247   :  { %772 = vst [vmem:[#allocation10] sm:$0xff] %v768_v33  ;;  %v766_v36 = vadd.f32 %v1231_v34, %v807_v23 }
 0x248   :  { %v771_v37 = vmax.f32 %v767_v35, 0.0 }
 0x249   :  { %v770_v38 = vmax.f32 %v766_v36, 0.0 }
 0x24a   :  { %775 = vst [vmem:[#allocation10 + $0x18] sm:$0xff] %v771_v37 }
 0x24b   :  { %774 = vst [vmem:[#allocation10 + $0x10] sm:$0xff] %v770_v38 }
 0x24c   :  { %1328 = shalt.err (!%p1325_p0)
}
 0x24d   :  { %s1329_s12 = scalar_lea.hbm %s1480_s5, 512 }
 0x24e   :  { %p1330_p1 = scmp.ne.s32.totalorder %s1480_s5, %s1329_s12  ;;  %p1333_p2 = scmp.lt.u32.totalorder %s1329_s12, %s1480_s5 }
 0x250   :  { %p1335_p3 = pnand %p1333_p2, %p1330_p1 }
 0x252   :  { %1338 = shalt.err (!%p1335_p3)
}
 0x253   :  { %787 = dma.vmem_to_hbm [thread:$0]  %s782_s9, 512, %s1480_s5, [#allocation6], %s1347_s30, %s1347_s30, %s1348_s6  }
 0x254   :  { %1343 = dma.done.wait [#allocation6], 512  }
 0x255   :  { %1344 = vsyncadd [#allocation6], 4294966784 }
 0x256   :  { %791 = vsyncpa [#allocation5], 1 }
 0x257   :  { %792 = vsyncpa [#allocation8], 1 }
 0x258   :  { %793 = vsyncpa [#allocation6], 1 }

</bundles_post_ra>
